<compile_context>
chip_gen: v7x
topology: tpu7x:2x2x1
jax: 0.10.0
libtpu: 0.0.40
codegen_flags: <defaults>
</compile_context>

<pallas_src>
import functools

import jax
import jax.numpy as jnp
from jax.experimental import pallas as pl
from jax.experimental.pallas import tpu as pltpu


def ms_temporal_kernel(x_ref, w_ref, scale_ref, shift_ref, o_ref, *, hw_lanes):
    # x_ref:     (1, C, F)   one (batch, spatial-tile) block, F = T * hw_lanes.
    #                        lanes = F (lane dense), sublanes = C.
    # w_ref:     (3, 3C, C)  per layer, temporal taps stacked on rows:
    #                        rows [k*C:(k+1)*C] = W_k (tap k applied as W_k @ x)
    # scale_ref: (3, C, 1)   folded BN scale per layer (inference mode)
    # shift_ref: (3, C, 1)   folded BN shift per layer
    # o_ref:     (1, C, F)
    C = x_ref.shape[1]
    F = x_ref.shape[2]
    L = hw_lanes
    mxu_dtype = w_ref.dtype

    cur = x_ref[0]                                       # (C, F), activation dtype

    # Boundary masks / zero slab hoisted out of the 3-layer loop
    # (JAX does not CSE broadcast_in_dim / iota).
    lane = jax.lax.broadcasted_iota(jnp.int32, (C, F), 1)
    not_first_t = lane >= L                              # kills rolled-in t = -1 rows
    not_last_t = lane < (F - L)                          # kills rolled-in t = T rows
    zeros = jnp.zeros((C, F), jnp.float32)

    acc = zeros
    for layer in range(3):
        # One fused MXU matmul for the three temporal taps of this layer.
        # TODO(synk): for very small C (<=16) a VPU broadcast-FMA path (weights as
        # SMEM scalars) would avoid the nearly idle MXU entirely; not implemented.
        s = jnp.dot(w_ref[layer], cur.astype(mxu_dtype),
                    preferred_element_type=jnp.float32)  # (3C, F)
        a = s[0:C, :]           # W_{k=0} x : contributes a[t-1] to y[t]
        b = s[C:2 * C, :]       # W_{k=1} x : contributes b[t]
        c = s[2 * C:3 * C, :]   # W_{k=2} x : contributes c[t+1] to y[t]

        # y[t] = a[t-1] + b[t] + c[t+1]  (zero padding at temporal boundaries).
        # A t-shift is a lane rotation by L (multiple of 128 -> lane-tile aligned,
        # runs on the XLU); boundary zeroing uses the hoisted masks.  All in
        # registers — no scratch read-modify-write.
        y = (b
             + jnp.where(not_first_t, pltpu.roll(a, L, axis=1), zeros)
             + jnp.where(not_last_t, pltpu.roll(c, F - L, axis=1), zeros))

        # Folded BatchNorm (inference) + ReLU, f32.
        y = jnp.maximum(y * scale_ref[layer] + shift_ref[layer], 0.0)

        acc = acc + y
        cur = y

    o_ref[0] = (acc * (1.0 / 3.0)).astype(o_ref.dtype)


def _pick_tile_hw(hw_padded, C, T, act_esize, n_batch, *,
                  vmem_budget_bytes=32 * 1024 * 1024, min_grid_points=4):
    """Largest multiple-of-128 divisor of hw_padded whose per-step footprint fits the
    VMEM budget; shrink further (if possible) so the 1-D grid has >= min_grid_points
    steps (keeps both v7x TensorCores busy and gives the pipeline some depth)."""
    cands = [t for t in range(128, hw_padded + 1, 128) if hw_padded % t == 0]
    if not cands:
        return hw_padded  # only possible when hw_padded < 128

    def footprint(tile):
        F = T * tile
        blocks = 2 * 2 * C * F * act_esize   # double-buffered in + out blocks
        temps = 12 * C * F * 4               # ~live f32 temporaries (cur, s, y, acc, masks)
        return blocks + temps

    fitting = [t for t in cands if footprint(t) <= vmem_budget_bytes]
    if not fitting:
        fitting = [cands[0]]
    idx = len(fitting) - 1
    while idx > 0 and n_batch * (hw_padded // fitting[idx]) < min_grid_points:
        idx -= 1
    return fitting[idx]


def multiscale_temporal_block(x_ncthw, w_all, scale, shift, *,
                              tile_hw=None, act_dtype=None):
    """x_ncthw: (N, C, T, H, W); w_all: (3, 3C, C); scale/shift: (3, C, 1).

    Inference-mode forward of MultiScale_Temporal_Block (BatchNorm folded).
    act_dtype controls HBM-activation / MXU-operand dtype (bf16 halves HBM traffic
    on the memory-bound cases); accumulation and BN/ReLU math stay f32.
    """
    N, C, T, H, W = x_ncthw.shape
    HW = H * W
    if act_dtype is None:
        act_dtype = w_all.dtype
    act_dtype = jnp.dtype(act_dtype)
    esize = act_dtype.itemsize

    # Pad HW to a multiple of 128 so tiles / shifts / stores stay lane aligned.
    # Padded columns never mix with real ones (conv is purely temporal) and are
    # sliced off before the final reshape.
    pad = (-HW) % 128
    HWp = HW + pad
    if tile_hw is None:
        tile_hw = _pick_tile_hw(HWp, C, T, esize, N)
    assert HWp % tile_hw == 0
    S = HWp // tile_hw
    F = T * tile_hw

    x4 = x_ncthw.astype(act_dtype).reshape(N, C, T, HW)
    if pad:
        x4 = jnp.pad(x4, ((0, 0), (0, 0), (0, 0), (0, pad)))
    if S == 1:
        x3 = x4.reshape(N, C, F)                 # contiguous -> free reshape
    else:
        # Wrapper-side layout plumbing (one XLA transpose) so each kernel block
        # arrives directly as a lane-dense (C, T*tile_hw) slab: no in-kernel
        # flatten/unflatten relayouts.
        x3 = (x4.reshape(N, C, T, S, tile_hw)
                .transpose(0, 3, 1, 2, 4)
                .reshape(N * S, C, F))

    kernel = functools.partial(ms_temporal_kernel, hw_lanes=tile_hw)
    flops = 3 * (2 * 3 * C + 6) * C * N * T * HWp
    bytes_accessed = (2 * N * C * T * HWp * esize
                      + w_all.size * w_all.dtype.itemsize
                      + (scale.size + shift.size) * 4)

    out3 = pl.pallas_call(
        kernel,
        out_shape=jax.ShapeDtypeStruct(x3.shape, act_dtype),
        grid=(N * S,),
        in_specs=[
            pl.BlockSpec((1, C, F), lambda i: (i, 0, 0)),
            pl.BlockSpec((3, 3 * C, C), lambda i: (0, 0, 0)),
            pl.BlockSpec((3, C, 1), lambda i: (0, 0, 0)),
            pl.BlockSpec((3, C, 1), lambda i: (0, 0, 0)),
        ],
        out_specs=pl.BlockSpec((1, C, F), lambda i: (i, 0, 0)),
        compiler_params=pltpu.CompilerParams(
            dimension_semantics=("parallel",),
            vmem_limit_bytes=48 * 1024 * 1024),
        cost_estimate=pl.CostEstimate(
            flops=int(flops), transcendentals=0, bytes_accessed=int(bytes_accessed)),
    )(x3, w_all, scale, shift)

    if S == 1:
        out4 = out3.reshape(N, C, T, HWp)
    else:
        out4 = (out3.reshape(N, S, C, T, tile_hw)
                    .transpose(0, 2, 3, 1, 4)
                    .reshape(N, C, T, HWp))
    if pad:
        out4 = out4[..., :HW]
    return out4.reshape(N, C, T, H, W).astype(x_ncthw.dtype)


def pack_params(params, eps=1e-5, dtype=jnp.float32):
    """params: 3 tuples of (conv_w (C,C,3,1,1), gamma, beta, mean, var) -> kernel args."""
    w_layers, scales, shifts = [], [], []
    for conv_w, gamma, beta, mean, var in params:
        wl = conv_w[:, :, :, 0, 0]                       # (C_out, C_in, 3)
        wl = jnp.transpose(wl, (2, 0, 1))                # (3, C_out, C_in), tap-major
        w_layers.append(wl.reshape(-1, wl.shape[-1]))    # (3*C_out, C_in)
        s = gamma / jnp.sqrt(var + eps)
        scales.append(s[:, None])                        # (C, 1)
        shifts.append((beta - mean * s)[:, None])        # (C, 1)
    return (jnp.stack(w_layers).astype(dtype),
            jnp.stack(scales).astype(jnp.float32),
            jnp.stack(shifts).astype(jnp.float32))


# ---------------- pure-JAX reference (mirrors the PyTorch forward) ----------------
def _ref_temporal_block(x_ncthw, conv_w, gamma, beta, mean, var, eps=1e-5):
    # Conv3d(C, C, kernel=(3,1,1), pad=(1,0,0), bias=False) + BN(eval) + ReLU
    y = jax.lax.conv_general_dilated(
        x_ncthw, conv_w, window_strides=(1, 1, 1),
        padding=((1, 1), (0, 0), (0, 0)),
        dimension_numbers=("NCDHW", "OIDHW", "NCDHW"))
    s = gamma / jnp.sqrt(var + eps)
    b = beta - mean * s
    y = y * s[None, :, None, None, None] + b[None, :, None, None, None]
    return jnp.maximum(y, 0.0)


def _ref_multiscale(x_ncthw, params):
    o1 = _ref_temporal_block(x_ncthw, *params[0])
    o2 = _ref_temporal_block(o1, *params[1])
    o3 = _ref_temporal_block(o2, *params[2])
    return (o1 + o2 + o3) / 3.0


if __name__ == "__main__":
    key = jax.random.PRNGKey(0)
    N, C, T, H, W = 2, 8, 8, 16, 16   # HW = 256 -> lane-aligned tiles, grid = N*S = 4
    eps = 1e-5

    keys = jax.random.split(key, 4)
    x_ncthw = jax.random.normal(keys[0], (N, C, T, H, W), jnp.float32)

    # Deterministic per-layer parameters (3 Temporal_Blocks).
    params = []
    for l in range(3):
        kw, kg, kb, km, kv = jax.random.split(keys[1 + l], 5)
        conv_w = 0.2 * jax.random.normal(kw, (C, C, 3, 1, 1), jnp.float32)  # (Cout, Cin, 3, 1, 1)
        gamma = 1.0 + 0.1 * jax.random.normal(kg, (C,), jnp.float32)
        beta = 0.05 * jax.random.normal(kb, (C,), jnp.float32)
        mean = 0.1 * jax.random.normal(km, (C,), jnp.float32)
        var = 0.5 + 0.5 * jnp.abs(jax.random.normal(kv, (C,), jnp.float32))
        params.append((conv_w, gamma, beta, mean, var))

    out_ref = _ref_multiscale(x_ncthw, params)

    # f32 path: tight check against the conv reference.
    w_all, scale, shift = pack_params(params, eps, dtype=jnp.float32)
    out = multiscale_temporal_block(x_ncthw, w_all, scale, shift)
    out = jax.block_until_ready(out)
    assert out.shape == (N, C, T, H, W)
    max_err = float(jnp.max(jnp.abs(out - out_ref)))
    assert jnp.allclose(out, out_ref, rtol=1e-4, atol=1e-4), max_err

    # bf16 HBM I/O + MXU operands (f32 accumulation): the memory-bound lever on v5e/v6e.
    w_bf, scale_bf, shift_bf = pack_params(params, eps, dtype=jnp.bfloat16)
    out_bf = multiscale_temporal_block(x_ncthw, w_bf, scale_bf, shift_bf,
                                       act_dtype=jnp.bfloat16)
    out_bf = jax.block_until_ready(out_bf)
    max_err_bf = float(jnp.max(jnp.abs(out_bf.astype(jnp.float32) - out_ref)))
    assert max_err_bf < 0.15, max_err_bf

    print("KERNEL_OK")
</pallas_src>

<mosaic_0001>
module attributes {stable_mosaic.version = 11 : i64} {
  func.func @ms_temporal_kernel(%arg0: i32, %arg1: memref<1x8x1024xf32, #tpu.memory_space<vmem>>, %arg2: memref<3x24x8xf32, #tpu.memory_space<vmem>>, %arg3: memref<3x8x1xf32, #tpu.memory_space<vmem>>, %arg4: memref<3x8x1xf32, #tpu.memory_space<vmem>>, %arg5: memref<1x8x1024xf32, #tpu.memory_space<vmem>>) attributes {dimension_semantics = [#tpu.dimension_semantics<parallel>], iteration_bounds = array<i64: 4>, scalar_prefetch = 0 : i64, scratch_operands = 0 : i64, tpu.core_type = #tpu.core_type<tc>, window_params = [{transform_indices = @transform_0, window_bounds = array<i64: 1, 8, 1024>}, {pipeline_mode = #tpu.pipeline_mode<synchronous>, transform_indices = @transform_1, window_bounds = array<i64: 3, 24, 8>}, {pipeline_mode = #tpu.pipeline_mode<synchronous>, transform_indices = @transform_2, window_bounds = array<i64: 3, 8, 1>}, {pipeline_mode = #tpu.pipeline_mode<synchronous>, transform_indices = @transform_3, window_bounds = array<i64: 3, 8, 1>}, {transform_indices = @transform_4, window_bounds = array<i64: 1, 8, 1024>}]} {
    %c0 = arith.constant 0 : index
    %c0_0 = arith.constant 0 : index
    %c0_1 = arith.constant 0 : index
    %0 = vector.load %arg1[%c0, %c0_0, %c0_1] : memref<1x8x1024xf32, #tpu.memory_space<vmem>>, vector<1x8x1024xf32>
    %1 = vector.shape_cast %0 : vector<1x8x1024xf32> to vector<8x1024xf32>
    %2 = tpu.iota {dimensions = array<i32: 1>} : vector<8x1024xi32>
    %c128_i32 = arith.constant 128 : i32
    %3 = vector.broadcast %c128_i32 : i32 to vector<8x1024xi32>
    %4 = arith.cmpi sge, %2, %3 : vector<8x1024xi32>
    %c896_i32 = arith.constant 896 : i32
    %5 = vector.broadcast %c896_i32 : i32 to vector<8x1024xi32>
    %6 = arith.cmpi slt, %2, %5 : vector<8x1024xi32>
    %cst = arith.constant 0.000000e+00 : f32
    %7 = vector.broadcast %cst : f32 to vector<8x1024xf32>
    %c0_2 = arith.constant 0 : index
    %c0_3 = arith.constant 0 : index
    %c0_4 = arith.constant 0 : index
    %8 = vector.load %arg2[%c0_2, %c0_3, %c0_4] : memref<3x24x8xf32, #tpu.memory_space<vmem>>, vector<1x24x8xf32>
    %9 = vector.shape_cast %8 : vector<1x24x8xf32> to vector<24x8xf32>
    %cst_5 = arith.constant dense<0.000000e+00> : vector<24x1024xf32>
    %10 = tpu.matmul %9, %1, %cst_5 {dimension_numbers = #tpu.dot_dimension_numbers<[1], [0], [0], [1], [0, 0, 1, 1], [], []>} : vector<24x8xf32>, vector<8x1024xf32>, vector<24x1024xf32> -> vector<24x1024xf32>
    %11 = vector.extract_strided_slice %10 {offsets = [0, 0], sizes = [8, 1024], strides = [1, 1]} : vector<24x1024xf32> to vector<8x1024xf32>
    %12 = vector.extract_strided_slice %10 {offsets = [8, 0], sizes = [8, 1024], strides = [1, 1]} : vector<24x1024xf32> to vector<8x1024xf32>
    %13 = vector.extract_strided_slice %10 {offsets = [16, 0], sizes = [8, 1024], strides = [1, 1]} : vector<24x1024xf32> to vector<8x1024xf32>
    %c128_i32_6 = arith.constant 128 : i32
    %14 = tpu.dynamic_rotate %11 by %c128_i32_6 dim 1 : vector<8x1024xf32>, i32 -> vector<8x1024xf32>
    %15 = arith.select %4, %14, %7 : vector<8x1024xi1>, vector<8x1024xf32>
    %16 = arith.addf %12, %15 : vector<8x1024xf32>
    %c896_i32_7 = arith.constant 896 : i32
    %17 = tpu.dynamic_rotate %13 by %c896_i32_7 dim 1 : vector<8x1024xf32>, i32 -> vector<8x1024xf32>
    %18 = arith.select %6, %17, %7 : vector<8x1024xi1>, vector<8x1024xf32>
    %19 = arith.addf %16, %18 : vector<8x1024xf32>
    %c0_8 = arith.constant 0 : index
    %c0_9 = arith.constant 0 : index
    %c0_10 = arith.constant 0 : index
    %20 = vector.load %arg3[%c0_8, %c0_9, %c0_10] : memref<3x8x1xf32, #tpu.memory_space<vmem>>, vector<1x8x1xf32>
    %21 = vector.shape_cast %20 : vector<1x8x1xf32> to vector<8x1xf32>
    %22 = vector.broadcast %21 : vector<8x1xf32> to vector<8x1024xf32>
    %23 = arith.mulf %19, %22 : vector<8x1024xf32>
    %c0_11 = arith.constant 0 : index
    %c0_12 = arith.constant 0 : index
    %c0_13 = arith.constant 0 : index
    %24 = vector.load %arg4[%c0_11, %c0_12, %c0_13] : memref<3x8x1xf32, #tpu.memory_space<vmem>>, vector<1x8x1xf32>
    %25 = vector.shape_cast %24 : vector<1x8x1xf32> to vector<8x1xf32>
    %26 = vector.broadcast %25 : vector<8x1xf32> to vector<8x1024xf32>
    %27 = arith.addf %23, %26 : vector<8x1024xf32>
    %cst_14 = arith.constant 0.000000e+00 : f32
    %28 = vector.broadcast %cst_14 : f32 to vector<8x1024xf32>
    %29 = arith.maximumf %27, %28 : vector<8x1024xf32>
    %30 = arith.addf %7, %29 : vector<8x1024xf32>
    %c1 = arith.constant 1 : index
    %c0_15 = arith.constant 0 : index
    %c0_16 = arith.constant 0 : index
    %31 = vector.load %arg2[%c1, %c0_15, %c0_16] : memref<3x24x8xf32, #tpu.memory_space<vmem>>, vector<1x24x8xf32>
    %32 = vector.shape_cast %31 : vector<1x24x8xf32> to vector<24x8xf32>
    %cst_17 = arith.constant dense<0.000000e+00> : vector<24x1024xf32>
    %33 = tpu.matmul %32, %29, %cst_17 {dimension_numbers = #tpu.dot_dimension_numbers<[1], [0], [0], [1], [0, 0, 1, 1], [], []>} : vector<24x8xf32>, vector<8x1024xf32>, vector<24x1024xf32> -> vector<24x1024xf32>
    %34 = vector.extract_strided_slice %33 {offsets = [0, 0], sizes = [8, 1024], strides = [1, 1]} : vector<24x1024xf32> to vector<8x1024xf32>
    %35 = vector.extract_strided_slice %33 {offsets = [8, 0], sizes = [8, 1024], strides = [1, 1]} : vector<24x1024xf32> to vector<8x1024xf32>
    %36 = vector.extract_strided_slice %33 {offsets = [16, 0], sizes = [8, 1024], strides = [1, 1]} : vector<24x1024xf32> to vector<8x1024xf32>
    %c128_i32_18 = arith.constant 128 : i32
    %37 = tpu.dynamic_rotate %34 by %c128_i32_18 dim 1 : vector<8x1024xf32>, i32 -> vector<8x1024xf32>
    %38 = arith.select %4, %37, %7 : vector<8x1024xi1>, vector<8x1024xf32>
    %39 = arith.addf %35, %38 : vector<8x1024xf32>
    %c896_i32_19 = arith.constant 896 : i32
    %40 = tpu.dynamic_rotate %36 by %c896_i32_19 dim 1 : vector<8x1024xf32>, i32 -> vector<8x1024xf32>
    %41 = arith.select %6, %40, %7 : vector<8x1024xi1>, vector<8x1024xf32>
    %42 = arith.addf %39, %41 : vector<8x1024xf32>
    %c1_20 = arith.constant 1 : index
    %c0_21 = arith.constant 0 : index
    %c0_22 = arith.constant 0 : index
    %43 = vector.load %arg3[%c1_20, %c0_21, %c0_22] : memref<3x8x1xf32, #tpu.memory_space<vmem>>, vector<1x8x1xf32>
    %44 = vector.shape_cast %43 : vector<1x8x1xf32> to vector<8x1xf32>
    %45 = vector.broadcast %44 : vector<8x1xf32> to vector<8x1024xf32>
    %46 = arith.mulf %42, %45 : vector<8x1024xf32>
    %c1_23 = arith.constant 1 : index
    %c0_24 = arith.constant 0 : index
    %c0_25 = arith.constant 0 : index
    %47 = vector.load %arg4[%c1_23, %c0_24, %c0_25] : memref<3x8x1xf32, #tpu.memory_space<vmem>>, vector<1x8x1xf32>
    %48 = vector.shape_cast %47 : vector<1x8x1xf32> to vector<8x1xf32>
    %49 = vector.broadcast %48 : vector<8x1xf32> to vector<8x1024xf32>
    %50 = arith.addf %46, %49 : vector<8x1024xf32>
    %cst_26 = arith.constant 0.000000e+00 : f32
    %51 = vector.broadcast %cst_26 : f32 to vector<8x1024xf32>
    %52 = arith.maximumf %50, %51 : vector<8x1024xf32>
    %53 = arith.addf %30, %52 : vector<8x1024xf32>
    %c2 = arith.constant 2 : index
    %c0_27 = arith.constant 0 : index
    %c0_28 = arith.constant 0 : index
    %54 = vector.load %arg2[%c2, %c0_27, %c0_28] : memref<3x24x8xf32, #tpu.memory_space<vmem>>, vector<1x24x8xf32>
    %55 = vector.shape_cast %54 : vector<1x24x8xf32> to vector<24x8xf32>
    %cst_29 = arith.constant dense<0.000000e+00> : vector<24x1024xf32>
    %56 = tpu.matmul %55, %52, %cst_29 {dimension_numbers = #tpu.dot_dimension_numbers<[1], [0], [0], [1], [0, 0, 1, 1], [], []>} : vector<24x8xf32>, vector<8x1024xf32>, vector<24x1024xf32> -> vector<24x1024xf32>
    %57 = vector.extract_strided_slice %56 {offsets = [0, 0], sizes = [8, 1024], strides = [1, 1]} : vector<24x1024xf32> to vector<8x1024xf32>
    %58 = vector.extract_strided_slice %56 {offsets = [8, 0], sizes = [8, 1024], strides = [1, 1]} : vector<24x1024xf32> to vector<8x1024xf32>
    %59 = vector.extract_strided_slice %56 {offsets = [16, 0], sizes = [8, 1024], strides = [1, 1]} : vector<24x1024xf32> to vector<8x1024xf32>
    %c128_i32_30 = arith.constant 128 : i32
    %60 = tpu.dynamic_rotate %57 by %c128_i32_30 dim 1 : vector<8x1024xf32>, i32 -> vector<8x1024xf32>
    %61 = arith.select %4, %60, %7 : vector<8x1024xi1>, vector<8x1024xf32>
    %62 = arith.addf %58, %61 : vector<8x1024xf32>
    %c896_i32_31 = arith.constant 896 : i32
    %63 = tpu.dynamic_rotate %59 by %c896_i32_31 dim 1 : vector<8x1024xf32>, i32 -> vector<8x1024xf32>
    %64 = arith.select %6, %63, %7 : vector<8x1024xi1>, vector<8x1024xf32>
    %65 = arith.addf %62, %64 : vector<8x1024xf32>
    %c2_32 = arith.constant 2 : index
    %c0_33 = arith.constant 0 : index
    %c0_34 = arith.constant 0 : index
    %66 = vector.load %arg3[%c2_32, %c0_33, %c0_34] : memref<3x8x1xf32, #tpu.memory_space<vmem>>, vector<1x8x1xf32>
    %67 = vector.shape_cast %66 : vector<1x8x1xf32> to vector<8x1xf32>
    %68 = vector.broadcast %67 : vector<8x1xf32> to vector<8x1024xf32>
    %69 = arith.mulf %65, %68 : vector<8x1024xf32>
    %c2_35 = arith.constant 2 : index
    %c0_36 = arith.constant 0 : index
    %c0_37 = arith.constant 0 : index
    %70 = vector.load %arg4[%c2_35, %c0_36, %c0_37] : memref<3x8x1xf32, #tpu.memory_space<vmem>>, vector<1x8x1xf32>
    %71 = vector.shape_cast %70 : vector<1x8x1xf32> to vector<8x1xf32>
    %72 = vector.broadcast %71 : vector<8x1xf32> to vector<8x1024xf32>
    %73 = arith.addf %69, %72 : vector<8x1024xf32>
    %cst_38 = arith.constant 0.000000e+00 : f32
    %74 = vector.broadcast %cst_38 : f32 to vector<8x1024xf32>
    %75 = arith.maximumf %73, %74 : vector<8x1024xf32>
    %76 = arith.addf %53, %75 : vector<8x1024xf32>
    %cst_39 = arith.constant 0.333333343 : f32
    %77 = vector.broadcast %cst_39 : f32 to vector<8x1024xf32>
    %78 = arith.mulf %76, %77 : vector<8x1024xf32>
    %c0_40 = arith.constant 0 : index
    %c0_41 = arith.constant 0 : index
    %c0_42 = arith.constant 0 : index
    %79 = vector.load %arg5[%c0_40, %c0_41, %c0_42] : memref<1x8x1024xf32, #tpu.memory_space<vmem>>, vector<1x8x1024xf32>
    %80 = vector.shape_cast %79 : vector<1x8x1024xf32> to vector<8x1024xf32>
    %81 = vector.shape_cast %78 : vector<8x1024xf32> to vector<1x8x1024xf32>
    tpu.vector_store %arg5[%c0_40, %c0_41, %c0_42], %81 {strides = array<i32>} : memref<1x8x1024xf32, #tpu.memory_space<vmem>>, vector<1x8x1024xf32>,
    return
  }
  func.func @transform_0(%arg0: i32) -> (i32, i32, i32) {
    %c0_i32 = arith.constant 0 : i32
    %c0_i32_0 = arith.constant 0 : i32
    %c0_i32_1 = arith.constant 0 : i32
    return %arg0, %c0_i32, %c0_i32_0 : i32, i32, i32
  }
  func.func @transform_1(%arg0: i32) -> (i32, i32, i32) {
    %c0_i32 = arith.constant 0 : i32
    %c0_i32_0 = arith.constant 0 : i32
    %c0_i32_1 = arith.constant 0 : i32
    %c0_i32_2 = arith.constant 0 : i32
    return %c0_i32, %c0_i32_0, %c0_i32_1 : i32, i32, i32
  }
  func.func @transform_2(%arg0: i32) -> (i32, i32, i32) {
    %c0_i32 = arith.constant 0 : i32
    %c0_i32_0 = arith.constant 0 : i32
    %c0_i32_1 = arith.constant 0 : i32
    %c0_i32_2 = arith.constant 0 : i32
    return %c0_i32, %c0_i32_0, %c0_i32_1 : i32, i32, i32
  }
  func.func @transform_3(%arg0: i32) -> (i32, i32, i32) {
    %c0_i32 = arith.constant 0 : i32
    %c0_i32_0 = arith.constant 0 : i32
    %c0_i32_1 = arith.constant 0 : i32
    %c0_i32_2 = arith.constant 0 : i32
    return %c0_i32, %c0_i32_0, %c0_i32_1 : i32, i32, i32
  }
  func.func @transform_4(%arg0: i32) -> (i32, i32, i32) {
    %c0_i32 = arith.constant 0 : i32
    %c0_i32_0 = arith.constant 0 : i32
    %c0_i32_1 = arith.constant 0 : i32
    return %arg0, %c0_i32, %c0_i32_0 : i32, i32, i32
  }
}

</mosaic_0001>

<bundles_post_ra>
// kernel: tpu_custom_call.1
= control target key start
LH: loop header
LB: loop body
LE: loop exit
PB: predicated region body
PF: predicated region fallthrough
CT: control target
= control target key end

     0   :  { %9 = vsyncpa [#allocation3], 0  ;;  %s2257_s0 = inlined_call_operand.hbm [shape: f32[4,8,1024], index: 0, kind: input, shape index: {}]   ;;  %s2258_s1 = inlined_call_operand.vmem [shape: f32[3,24,8], index: 1, kind: input, shape index: {}]   ;;  %s2259_s2 = inlined_call_operand.vmem [shape: f32[3,8,1], index: 2, kind: input, shape index: {}]   ;;  %s2260_s3 = inlined_call_operand.vmem [shape: f32[3,8,1], index: 3, kind: input, shape index: {}]   ;;  %s2261_s4 = inlined_call_operand.hbm [shape: f32[4,8,1024], index: 4, kind: output, shape index: {}]  }
   0x1   :  { %11 = vsyncpa [#allocation3 + $0x1], 0 }
   0x2   :  { %12 = vsyncpa [#allocation4], 0 }
   0x3   :  { %14 = vsyncpa [#allocation4 + $0x1], 0  ;;  %s1854_s15 = smov 0   ;;  %s1856_s16 = smov 0  }
   0x4   :  { %s1858_s17 = smov 0   ;;  %s1860_s18 = smov 0  }
   0x5 LB: > { %s1875_s19 = sadd.s32 4294967295, %s1823_s18   ;;  %s1615_s20 = sadd.s32 4294967294, %s1823_s18   ;;  %s1823_s18 = sphi %s1860_s18, %s2275_s18   ;;  %s1819_s17 = sphi %s1858_s17, %s2274_s17   ;;  %s1815_s16 = sphi %s1856_s16, %s2273_s16   ;;  %s1811_s15 = sphi %s1854_s15, %s2272_s15  }
   0x6   : > { %s1879_s21 = sadd.s32 1, %s1823_s18   ;;  %s27_s22 = sadd.s32 1, %s1819_s17 }
   0x7   : > { %s24_s23 = ssub.s32 %s1823_s18, %s1879_s21  ;;  %p34_p0 = scmp.ne.s32.totalorder %s1819_s17, %s1815_s16 }
   0x8   : > { %p25_p1 = scmp.eq.s32.totalorder %s24_s23, 0  ;;  %p35_p2 = scmp.eq.s32.totalorder %s1823_s18, 0 }
   0x9   : > { %p40_p3 = scmp.ne.s32.totalorder %s1815_s16, %s1811_s15  ;;  %p41_p4 = scmp.eq.s32.totalorder %s1875_s19, 0 }
   0xa   : > { %s1891_s24 = scalar_select %p25_p1, %s1819_s17, %s27_s22  }
   0xb   : > { %p1893_p5 = por %p35_p2, %p34_p0  ;;  %p1897_p6 = por %p41_p4, %p40_p3 }
   0xc   : > { %p127_p7 = scmp.eq.s32.totalorder %s1875_s19, 3  ;;  %p133_p8 = scmp.eq.s32.totalorder %s1615_s20, 3 }
   0xd   : > { %p1689_p9 = scmp.lt.s32.totalorder %s1823_s18, 4  ;;  %s162_s29 = sand.u32 1, %s1819_s17  }
   0xe   : > { %p1903_p10 = por %p127_p7, %p34_p0  ;;  %p1907_p11 = por %p133_p8, %p40_p3 }
   0xf   : > { %s1675_s30 = sshll.u32 %s1823_s18, 10  ;;  %s1618_s5 = sshll.u32 %s162_s29, 6 }
  0x10   : > { %s2265_s27 = scalar_select %p1903_p10, 1, 0 }
  0x11   : > { %s2266_s28 = scalar_select %p1907_p11, 1, 0 }
  0x12   : > { %s1916_s8 = scalar_lea.hbm %s2257_s0, %s1675_s30  ;;  %s166_s9 = scalar_lea.vmem [#allocation2], %s1618_s5 }
  0x13   : > { %s174_s10 = sshll.u32 %s166_s9, 4  ;;  %p1920_p12 = pnand %p1689_p9, %p1893_p5  ;;  %s1924_s10 = int_to_ptr.vmem [resolvable:$true] %s174_s10 }
  0x14   : > { %s163_s12 = scalar_lea.sflag [#allocation3], %s162_s29  ;;  %s1727_s13 = scalar_lea.hbm %s1916_s8, 1024 }
  0x15   : > { %p1728_p1 = scmp.ne.s32.totalorder %s1916_s8, %s1727_s13  ;;  %p1729_p2 = pneg %p1920_p12 }
  0x16   : > { %s1732_s22 = scalar_lea.hbm %s2257_s0, 4096  ;;  %p1733_p5 = scmp.lt.u32.totalorder %s1916_s8, %s2257_s0 }
  0x17   : > { %p1730_p3 = pnand %p1729_p2, %p1728_p1  ;;  %p1734_p7 = scmp.lt.u32.totalorder %s1732_s22, %s1727_s13 }
  0x18   : > { %p1736_p9 = scmp.lt.u32.totalorder %s1727_s13, %s1916_s8 }
  0x19   : > { %p1731_p4 = pneg %p1730_p3  ;;  %p1735_p8 = por %p1734_p7, %p1733_p5 }
  0x1b   : > { %p1737_p13 = por %p1736_p9, %p1735_p8 }
  0x1d   : > { %p1738_p0 = pnand %p1737_p13, %p1731_p4 }
  0x1f   : > { %1741 = shalt.err (!%p1738_p0)
}
  0x20   : > { %s1742_s29 = scalar_lea.vmem %s1924_s10, 1024  ;;  %s1825_s30 = smov [#allocation2]  }
  0x21   : > { %p1743_p1 = scmp.ne.s32.totalorder %s1924_s10, %s1742_s29  ;;  %s1747_s5 = sshll.u32 %s1825_s30, 4  ;;  %s1748_s5 = int_to_ptr.vmem [resolvable:$false] %s1747_s5 }
  0x22   : > { %s1749_s6 = scalar_lea.vmem %s1748_s5, 2048  ;;  %p1750_p10 = scmp.lt.s32.totalorder %s1924_s10, %s1748_s5 }
  0x23   : > { %p1745_p3 = pnand %p1743_p1, %p1729_p2  ;;  %p1751_p5 = scmp.lt.s32.totalorder %s1749_s6, %s1742_s29 }
  0x25   : > { %p1746_p11 = pneg %p1745_p3  ;;  %p1752_p7 = por %p1751_p5, %p1750_p10 }
  0x27   : > { %p1753_p8 = pnand %p1752_p7, %p1746_p11 }
  0x29   : > { %1756 = shalt.err (!%p1753_p8)
}
  0x2a   : > { %1684 = dma.hbm_to_vmem [thread:$0]  (!%p1920_p12), %s1916_s8, 1024, %s1924_s10, %s163_s12  }
  0x2b   : > { %p2268_p13 = scmp.lt.s32.totalorder %s1823_s18, 5  ;;  %p2269_p0 = scmp.ge.s32.totalorder %s1823_s18, 1 }
  0x2d   : > { %p180_p2 = pnand %p2269_p0, %p2268_p13 }
  0x2e   : > { %s1958_s7 = sand.u32 (!%p180_p2), 1, %s1815_s16  }
  0x2f   : > { %183 = sbr.rel (%p180_p2) target bundleno = 791 (0x317), region = 36  ;;  %s1622_s9 = sshll.u32 (!%p180_p2), %s1958_s7, 6 }
  0x30   : > { %s186_s13 = scalar_lea.sflag (!%p180_p2), [#allocation3], %s1958_s7  ;;  %s189_s11 = scalar_lea.vmem (!%p180_p2), [#allocation2], %s1622_s9 }
  0x36   : > { %1802 = dma.done.wait (%p1897_p6), %s186_s13, 1024  }
  0x37   : > { %1804 = vsyncadd (%p1897_p6), %s186_s13, 4294966272  ;;  %v1826_v0 = vmov 0.0   ;;  %v1827_v1 = vmov 0   ;;  %v215_v2 = vld [vmem:[%s189_s11 + $0x8] sm:$0xff]  ;;  %v217_v3 = vld [vmem:[%s189_s11 + $0x18] sm:$0xff]  ;;  %vm250_vm0 = vcmask 64512  }
  0x38   : > { %324 = vmatprep.mubr.f32.mxu0 %v1826_v0  ;;  %407 = vmatprep.mubr.f32.mxu1 %v1826_v0  ;;  %v214_v4 = vld [vmem:[%s189_s11] sm:$0xff]  ;;  %v216_v5 = vld [vmem:[%s189_s11 + $0x10] sm:$0xff]  ;;  %v219_v7 = vld [vmem:[%s189_s11 + $0x28] sm:$0xff]  ;;  %s2179_s8 = scalar_lea.vmem [#allocation5], %s1622_s9  ;;  %s1676_s9 = sshll.u32 %s1875_s19, 10 }
  0x39   : > { %1725 = vset.pattern.permute.xlu0 %v1827_v1  ;;  %1726 = vset.pattern.permute.xlu1 %v1827_v1  ;;  %v247_v6 = vld [vmem:[%s2258_s1] sm:$0xff]  ;;  %v221_v8 = vld [vmem:[%s189_s11 + $0x38] sm:$0xff]  ;;  %v220_v10 = vld [vmem:[%s189_s11 + $0x30] sm:$0xff]  ;;  %s1545_s10 = sshll.u32 %s2179_s8, 4  ;;  %s2210_s14 = scalar_lea.hbm %s2261_s4, %s1676_s9  ;;  %s2212_s10 = int_to_ptr.vmem [resolvable:$true] %s1545_s10 }
  0x3a   : > { %260 = vmatprep.subr.mxu0 %v215_v2  ;;  %343 = vmatprep.subr.mxu1 %v217_v3  ;;  %v218_v9 = vld [vmem:[%s189_s11 + $0x20] sm:$0xff]  ;;  %v248_v11 = vld [vmem:[%s2258_s1 + $0x8] sm:$0xff]  ;;  %v249_v13 = vld [vmem:[%s2258_s1 + $0x10] sm:$0xff]  ;;  %s1531_s19 = scalar_lea.sflag [#allocation4], %s1958_s7  ;;  %s1757_s20 = scalar_lea.vmem %s2212_s10, 1024 }
  0x3b   : > { %261 = vmatpush1.msra.mxu0 %v214_v4  ;;  %344 = vmatpush1.msra.mxu1 %v216_v5  ;;  %v624_v12 = vld [vmem:[%s2259_s2] sm:$0xff]  ;;  %v1668_v15 = vld [vmem:[%s2259_s2 + $0x10] sm:$0xff]  ;;  %v1651_v16 = vld [vmem:[%s2259_s2 + $0x8] sm:$0xff]  ;;  %p1758_p6 = scmp.ne.s32.totalorder %s2212_s10, %s1757_s20  ;;  %p2270_p10 = scmp.ne.s32.totalorder %s2265_s27, 0 }
  0x3c   : > { %1624 = vmatmul.mubr.msk.f32.vlgmr.msra.gmra.mrb[0].mxu0 %vm250_vm0, %v247_v6  ;;  %1627 = vmatmul.mubr.msk.f32.vlgmr.msra.gmra.mrb[0].mxu1 %vm250_vm0, %v247_v6  ;;  %v638_v14 = vld [vmem:[%s2260_s3] sm:$0xff]  ;;  %v1652_v17 = vld [vmem:[%s2260_s3 + $0x8] sm:$0xff]  ;;  %v1669_v18 = vld [vmem:[%s2260_s3 + $0x10] sm:$0xff]  ;;  %s1828_s22 = smov [#allocation5]  }
  0x3d   : > { %330 = vmatprep.mubr.f32.mxu0 %v1826_v0  ;;  %413 = vmatprep.mubr.f32.mxu1 %v1826_v0  ;;  %v1636_v51 = vld [vmem:[%s2258_s1 + $0x18] sm:$0xff]  ;;  %v1637_v61 = vld [vmem:[%s2258_s1 + $0x20] sm:$0xff]  ;;  %p1759_p11 = pnand %p1758_p6, %p2270_p10  ;;  %s1761_s23 = sshll.u32 %s1828_s22, 4  ;;  %s1762_s23 = int_to_ptr.vmem [resolvable:$false] %s1761_s23 }
  0x3e   : > { %426 = vmatprep.subr.mxu0 %v219_v7  ;;  %509 = vmatprep.subr.mxu1 %v221_v8  ;;  %s1763_s25 = scalar_lea.vmem %s1762_s23, 2048  ;;  %p1764_p4 = scmp.lt.s32.totalorder %s2212_s10, %s1762_s23 }
  0x3f   : > { %427 = vmatpush1.msra.mxu0 %v218_v9  ;;  %510 = vmatpush1.msra.mxu1 %v220_v10  ;;  %p1760_p12 = pneg %p1759_p11  ;;  %p1765_p9 = scmp.lt.s32.totalorder %s1763_s25, %s1757_s20 }
  0x40   : > { %1625 = vmatmul.mubr.msk.f32.gmra.mrb[2].mxu0 %vm250_vm0, %v248_v11  ;;  %1628 = vmatmul.mubr.msk.f32.gmra.mrb[2].mxu1 %vm250_vm0, %v248_v11 }
  0x41   : > { %336 = vmatprep.mubr.f32.mxu0 %v1826_v0  ;;  %419 = vmatprep.mubr.f32.mxu1 %v1826_v0  ;;  %p1766_p1 = por %p1765_p9, %p1764_p4 }
  0x42   : > { %627 = vperm.xlu0 %1725, %v624_v12   ;;  %1049 = vperm.xlu1 %1726, %v1651_v16  }
  0x43   : > { %p1767_p3 = pnand %p1766_p1, %p1760_p12 }
  0x44   : > { %1626 = vmatmul.mubr.msk.f32.gmra.mrb[4].mxu0 %vm250_vm0, %v249_v13  ;;  %1629 = vmatmul.mubr.msk.f32.gmra.mrb[4].mxu1 %vm250_vm0, %v249_v13 }
  0x45   : > { %490 = vmatprep.mubr.f32.mxu0 %v1826_v0  ;;  %573 = vmatprep.mubr.f32.mxu1 %v1826_v0 }
  0x46   : > { %641 = vperm.xlu0 %1725, %v638_v14   ;;  %1064 = vperm.xlu1 %1726, %v1652_v17  }
  0x48   : > { %1630 = vmatmul.mubr.msk.f32.vlgmr.msra.gmra.mrb[6].mxu0 %vm250_vm0, %v247_v6  ;;  %1633 = vmatmul.mubr.msk.f32.vlgmr.msra.gmra.mrb[6].mxu1 %vm250_vm0, %v247_v6 }
  0x49   : > { %496 = vmatprep.mubr.f32.mxu0 %v1826_v0  ;;  %579 = vmatprep.mubr.f32.mxu1 %v1826_v0 }
  0x4a   : > { %1472 = vperm.xlu0 %1725, %v1668_v15   ;;  %1487 = vperm.xlu1 %1726, %v1669_v18  }
  0x4c   : > { %1631 = vmatmul.mubr.msk.f32.gmra.mrb[8].mxu0 %vm250_vm0, %v248_v11  ;;  %1634 = vmatmul.mubr.msk.f32.gmra.mrb[8].mxu1 %vm250_vm0, %v248_v11  ;;  %v1638_v11 = vld [vmem:[%s2258_s1 + $0x28] sm:$0xff] }
  0x4d   : > { %502 = vmatprep.mubr.f32.mxu0 %v1826_v0  ;;  %585 = vmatprep.mubr.f32.mxu1 %v1826_v0 }
  0x50   : > { %1632 = vmatmul.mubr.msk.f32.gmra.mrb[10].mxu0 %vm250_vm0, %v249_v13  ;;  %1635 = vmatmul.mubr.msk.f32.gmra.mrb[10].mxu1 %vm250_vm0, %v249_v13 }
  0x51   : > { %745 = vmatprep.mubr.f32.mxu0 %v1826_v0  ;;  %828 = vmatprep.mubr.f32.mxu1 %v1826_v0 }
  0xc1   : > { %v628_v23 = vpop.permute.xlu0 %627 }
  0xc5   : > { %v642_v38 = vpop.permute.xlu0 %641 }
 0x10f   : > { %v326_v19 = vpop.f32.mrb[0].mxu0  ;;  %v409_v20 = vpop.f32.mrb[0].mxu1 }
 0x110   : > { %v328_v21 = vpop.f32.mrb[1].mxu0  ;;  %v411_v22 = vpop.f32.mrb[1].mxu1 }
 0x113   : > { %v332_v24 = vpop.f32.mrb[2].mxu0  ;;  %v415_v25 = vpop.f32.mrb[2].mxu1 }
 0x114   : > { %v602_v26 = vadd.f32 %v415_v25, %v328_v21  ;;  %v334_v27 = vpop.f32.mrb[3].mxu0  ;;  %v417_v28 = vpop.f32.mrb[3].mxu1 }
 0x115   : > { %v601_v29 = vadd.f32 %v334_v27, %v326_v19  ;;  %v603_v30 = vadd.f32 %v417_v28, %v409_v20 }
 0x117   : > { %v338_v31 = vpop.f32.mrb[4].mxu0  ;;  %v421_v32 = vpop.f32.mrb[4].mxu1 }
 0x118   : > { %v617_v33 = vadd.f32 %v601_v29, %v421_v32  ;;  %v340_v34 = vpop.f32.mrb[5].mxu0  ;;  %v423_v35 = vpop.f32.mrb[5].mxu1 }
 0x119   : > { %v616_v36 = vadd.f32 %v340_v34, %v332_v24  ;;  %v618_v37 = vadd.f32 %v602_v26, %v423_v35  ;;  %v1050_v31 = vpop.permute.xlu1 %1049 }
 0x11a   : > { %v631_v39 = vmul.f32 %v628_v23, %v617_v33 }
 0x11b   : > { %v630_v40 = vmul.f32 %v628_v23, %v616_v36  ;;  %v492_v41 = vpop.f32.mrb[6].mxu0  ;;  %v575_v42 = vpop.f32.mrb[6].mxu1  ;;  %v632_v58 = vmul.f32 %v628_v23, %v618_v37 }
 0x11c   : > { %v494_v43 = vpop.f32.mrb[7].mxu0  ;;  %v577_v44 = vpop.f32.mrb[7].mxu1  ;;  %v2021_v45 = vadd.f32 %v642_v38, %v631_v39 }
 0x11d   : > { %v2023_v46 = vadd.f32 %v642_v38, %v630_v40  ;;  %v2040_v8 = vadd.f32 %v642_v38, %v632_v58  ;;  %v1065_v44 = vpop.permute.xlu1 %1064 }
 0x11e   : > { %v653_v47 = vmax.f32 %v2021_v45, 0.0 }
 0x11f   : > { %v652_v48 = vmax.f32 %v2023_v46, 0.0  ;;  %v498_v49 = vpop.f32.mrb[8].mxu0  ;;  %v581_v50 = vpop.f32.mrb[8].mxu1  ;;  %v654_v19 = vmax.f32 %v2040_v8, 0.0 }
 0x120   : > { %v604_v52 = vadd.f32 %v498_v49, %v411_v22  ;;  %v606_v53 = vadd.f32 %v581_v50, %v494_v43  ;;  %v500_v54 = vpop.f32.mrb[9].mxu0  ;;  %v583_v55 = vpop.f32.mrb[9].mxu1  ;;  %681 = vmatprep.subr.mxu0 %v653_v47 }
 0x121   : > { %v605_v56 = vadd.f32 %v500_v54, %v492_v41  ;;  %v607_v57 = vadd.f32 %v583_v55, %v575_v42  ;;  %682 = vmatpush1.msra.mxu0 %v652_v48 }
 0x122   : > { %1639 = vmatmul.mubr.msk.f32.vlgmr.msra.gmra.mrb[12].mxu0 %vm250_vm0, %v1636_v51 }
 0x123   : > { %v504_v59 = vpop.f32.mrb[10].mxu0  ;;  %v587_v60 = vpop.f32.mrb[10].mxu1  ;;  %751 = vmatprep.mubr.f32.mxu0 %v1826_v0  ;;  %v637_v3 = vmul.f32 %v628_v23, %v607_v57 }
 0x124   : > { %v619_v62 = vadd.f32 %v603_v30, %v504_v59  ;;  %v621_v63 = vadd.f32 %v605_v56, %v587_v60  ;;  %v506_v1 = vpop.f32.mrb[11].mxu0  ;;  %v589_v2 = vpop.f32.mrb[11].mxu1 }
 0x125   : > { %v620_v4 = vadd.f32 %v604_v52, %v506_v1  ;;  %v622_v5 = vadd.f32 %v606_v53, %v589_v2  ;;  %v2052_v15 = vadd.f32 %v642_v38, %v637_v3 }
 0x126   : > { %v633_v6 = vmul.f32 %v628_v23, %v619_v62  ;;  %v635_v7 = vmul.f32 %v628_v23, %v621_v63  ;;  %1640 = vmatmul.mubr.msk.f32.gmra.mrb[14].mxu0 %vm250_vm0, %v1637_v61 }
 0x127   : > { %v634_v9 = vmul.f32 %v628_v23, %v620_v4  ;;  %v636_v10 = vmul.f32 %v628_v23, %v622_v5  ;;  %757 = vmatprep.mubr.f32.mxu0 %v1826_v0  ;;  %v659_v21 = vmax.f32 %v2052_v15, 0.0 }
 0x128   : > { %v2046_v12 = vadd.f32 %v642_v38, %v633_v6  ;;  %v2048_v13 = vadd.f32 %v642_v38, %v635_v7 }
 0x129   : > { %v2050_v14 = vadd.f32 %v642_v38, %v634_v9  ;;  %v2054_v16 = vadd.f32 %v642_v38, %v636_v10  ;;  %v1653_v10 = vld [vmem:[%s2258_s1 + $0x30] sm:$0xff] }
 0x12a   : > { %1641 = vmatmul.mubr.msk.f32.gmra.mrb[16].mxu0 %vm250_vm0, %v1638_v11  ;;  %v655_v17 = vmax.f32 %v2046_v12, 0.0  ;;  %v657_v18 = vmax.f32 %v2048_v13, 0.0 }
 0x12b   : > { %v656_v20 = vmax.f32 %v2050_v14, 0.0  ;;  %911 = vmatprep.mubr.f32.mxu0 %v1826_v0  ;;  %v658_v22 = vmax.f32 %v2054_v16, 0.0 }
 0x12c   : > { %764 = vmatprep.subr.mxu1 %v655_v17  ;;  %847 = vmatprep.subr.mxu0 %v657_v18 }
 0x12d   : > { %765 = vmatpush1.msra.mxu1 %v654_v19  ;;  %848 = vmatpush1.msra.mxu0 %v656_v20 }
 0x12e   : > { %1642 = vmatmul.mubr.msk.f32.vlgmr.msra.gmra.mrb[12].mxu1 %vm250_vm0, %v1636_v51  ;;  %1645 = vmatmul.mubr.msk.f32.vlgmr.msra.gmra.mrb[18].mxu0 %vm250_vm0, %v1636_v51 }
 0x12f   : > { %930 = vmatprep.subr.mxu1 %v659_v21  ;;  %834 = vmatprep.mubr.f32.mxu1 %v1826_v0 }
 0x130   : > { %931 = vmatpush1.msra.mxu1 %v658_v22  ;;  %917 = vmatprep.mubr.f32.mxu0 %v1826_v0 }
 0x132   : > { %1643 = vmatmul.mubr.msk.f32.gmra.mrb[14].mxu1 %vm250_vm0, %v1637_v61  ;;  %1646 = vmatmul.mubr.msk.f32.gmra.mrb[20].mxu0 %vm250_vm0, %v1637_v61 }
 0x133   : > { %840 = vmatprep.mubr.f32.mxu1 %v1826_v0  ;;  %923 = vmatprep.mubr.f32.mxu0 %v1826_v0 }
 0x136   : > { %1644 = vmatmul.mubr.msk.f32.gmra.mrb[16].mxu1 %vm250_vm0, %v1638_v11  ;;  %1647 = vmatmul.mubr.msk.f32.gmra.mrb[22].mxu0 %vm250_vm0, %v1638_v11 }
 0x137   : > { %994 = vmatprep.mubr.f32.mxu1 %v1826_v0  ;;  %1168 = vmatprep.mubr.f32.mxu0 %v1826_v0 }
 0x13a   : > { %1648 = vmatmul.mubr.msk.f32.vlgmr.msra.gmra.mrb[18].mxu1 %vm250_vm0, %v1636_v51 }
 0x13b   : > { %1000 = vmatprep.mubr.f32.mxu1 %v1826_v0 }
 0x13e   : > { %1649 = vmatmul.mubr.msk.f32.gmra.mrb[20].mxu1 %vm250_vm0, %v1637_v61 }
 0x13f   : > { %1006 = vmatprep.mubr.f32.mxu1 %v1826_v0 }
 0x142   : > { %1650 = vmatmul.mubr.msk.f32.gmra.mrb[22].mxu1 %vm250_vm0, %v1638_v11 }
 0x143   : > { %1251 = vmatprep.mubr.f32.mxu1 %v1826_v0 }
 0x1f5   : > { %v747_v23 = vpop.f32.mrb[12].mxu0 }
 0x1f6   : > { %v749_v24 = vpop.f32.mrb[13].mxu0 }
 0x1f9   : > { %v753_v25 = vpop.f32.mrb[14].mxu0 }
 0x1fa   : > { %v755_v26 = vpop.f32.mrb[15].mxu0 }
 0x1fb   : > { %v1022_v27 = vadd.f32 %v755_v26, %v747_v23 }
 0x1fd   : > { %v759_v28 = vpop.f32.mrb[16].mxu0 }
 0x1fe   : > { %v761_v29 = vpop.f32.mrb[17].mxu0  ;;  %v1654_v28 = vld [vmem:[%s2258_s1 + $0x38] sm:$0xff] }
 0x1ff   : > { %v1037_v30 = vadd.f32 %v761_v29, %v753_v25 }
 0x201   : > { %v830_v32 = vpop.f32.mrb[12].mxu1  ;;  %v913_v33 = vpop.f32.mrb[18].mxu0  ;;  %v1052_v49 = vmul.f32 %v1050_v31, %v1037_v30 }
 0x202   : > { %v832_v34 = vpop.f32.mrb[13].mxu1  ;;  %v915_v35 = vpop.f32.mrb[19].mxu0 }
 0x203   : > { %v2094_v62 = vadd.f32 %v1065_v44, %v1052_v49 }
 0x205   : > { %v836_v36 = vpop.f32.mrb[14].mxu1  ;;  %v919_v37 = vpop.f32.mrb[20].mxu0  ;;  %v1075_v9 = vmax.f32 %v2094_v62, 0.0 }
 0x206   : > { %v1023_v38 = vadd.f32 %v836_v36, %v749_v24  ;;  %v1025_v39 = vadd.f32 %v919_v37, %v832_v34  ;;  %v838_v40 = vpop.f32.mrb[15].mxu1  ;;  %v921_v41 = vpop.f32.mrb[21].mxu0 }
 0x207   : > { %v1024_v42 = vadd.f32 %v838_v40, %v830_v32  ;;  %v1026_v43 = vadd.f32 %v921_v41, %v913_v33 }
 0x209   : > { %v842_v50 = vpop.f32.mrb[16].mxu1  ;;  %v925_v51 = vpop.f32.mrb[22].mxu0 }
 0x20a   : > { %v1038_v52 = vadd.f32 %v1022_v27, %v842_v50  ;;  %v1040_v53 = vadd.f32 %v1024_v42, %v925_v51  ;;  %v844_v54 = vpop.f32.mrb[17].mxu1  ;;  %v927_v55 = vpop.f32.mrb[23].mxu0 }
 0x20b   : > { %v1039_v56 = vadd.f32 %v1023_v38, %v844_v54  ;;  %v1041_v57 = vadd.f32 %v1025_v39, %v927_v55  ;;  %v1655_v38 = vld [vmem:[%s2258_s1 + $0x40] sm:$0xff] }
 0x20c   : > { %v1053_v58 = vmul.f32 %v1050_v31, %v1038_v52  ;;  %v1055_v59 = vmul.f32 %v1050_v31, %v1040_v53 }
 0x20d   : > { %v1054_v60 = vmul.f32 %v1050_v31, %v1039_v56  ;;  %v996_v61 = vpop.f32.mrb[18].mxu1  ;;  %v1056_v25 = vmul.f32 %v1050_v31, %v1041_v57 }
 0x20e   : > { %v998_v63 = vpop.f32.mrb[19].mxu1  ;;  %v2096_v1 = vadd.f32 %v1065_v44, %v1053_v58  ;;  %v2098_v2 = vadd.f32 %v1065_v44, %v1055_v59 }
 0x20f   : > { %v2100_v3 = vadd.f32 %v1065_v44, %v1054_v60  ;;  %v1473_v63 = vpop.permute.xlu0 %1472 }
 0x210   : > { %v1076_v4 = vmax.f32 %v2096_v1, 0.0  ;;  %v1078_v5 = vmax.f32 %v2098_v2, 0.0 }
 0x211   : > { %v1077_v6 = vmax.f32 %v2100_v3, 0.0  ;;  %v1002_v7 = vpop.f32.mrb[20].mxu1 }
 0x212   : > { %v1027_v11 = vadd.f32 %v1002_v7, %v915_v35  ;;  %v1004_v23 = vpop.f32.mrb[21].mxu1  ;;  %1104 = vmatprep.subr.mxu0 %v1076_v4  ;;  %1187 = vmatprep.subr.mxu1 %v1078_v5  ;;  %v2128_v35 = vadd.f32 %v1065_v44, %v1056_v25 }
 0x213   : > { %v1028_v24 = vadd.f32 %v1004_v23, %v996_v61  ;;  %1105 = vmatpush1.msra.mxu0 %v1075_v9  ;;  %1188 = vmatpush1.msra.mxu1 %v1077_v6 }
 0x214   : > { %1656 = vmatmul.mubr.msk.f32.vlgmr.msra.gmra.mrb[24].mxu0 %vm250_vm0, %v1653_v10  ;;  %1659 = vmatmul.mubr.msk.f32.vlgmr.msra.gmra.mrb[24].mxu1 %vm250_vm0, %v1653_v10  ;;  %v1079_v41 = vmax.f32 %v2128_v35, 0.0 }
 0x215   : > { %v1059_v26 = vmul.f32 %v1050_v31, %v1028_v24  ;;  %v1008_v27 = vpop.f32.mrb[22].mxu1  ;;  %1174 = vmatprep.mubr.f32.mxu0 %v1826_v0  ;;  %1257 = vmatprep.mubr.f32.mxu1 %v1826_v0 }
 0x216   : > { %v1042_v29 = vadd.f32 %v1026_v43, %v1008_v27  ;;  %v1010_v30 = vpop.f32.mrb[23].mxu1  ;;  %v1087_v15 = vadd.f32 %v1079_v41, %v656_v20 }
 0x217   : > { %v1043_v32 = vadd.f32 %v1027_v11, %v1010_v30  ;;  %v2124_v33 = vadd.f32 %v1065_v44, %v1059_v26  ;;  %v1488_v11 = vpop.permute.xlu1 %1487 }
 0x218   : > { %v1057_v34 = vmul.f32 %v1050_v31, %v1042_v29  ;;  %1657 = vmatmul.mubr.msk.f32.gmra.mrb[26].mxu0 %vm250_vm0, %v1654_v28  ;;  %1660 = vmatmul.mubr.msk.f32.gmra.mrb[26].mxu1 %vm250_vm0, %v1654_v28 }
 0x219   : > { %v1058_v36 = vmul.f32 %v1050_v31, %v1043_v32  ;;  %1180 = vmatprep.mubr.f32.mxu0 %v1826_v0  ;;  %1263 = vmatprep.mubr.f32.mxu1 %v1826_v0  ;;  %v1082_v37 = vmax.f32 %v2124_v33, 0.0 }
 0x21a   : > { %v2136_v39 = vadd.f32 %v1065_v44, %v1057_v34 }
 0x21b   : > { %v2138_v40 = vadd.f32 %v1065_v44, %v1058_v36  ;;  %1353 = vmatprep.subr.mxu1 %v1082_v37  ;;  %v1084_v36 = vadd.f32 %v1076_v4, %v653_v47 }
 0x21c   : > { %1658 = vmatmul.mubr.msk.f32.gmra.mrb[28].mxu0 %vm250_vm0, %v1655_v38  ;;  %1661 = vmatmul.mubr.msk.f32.gmra.mrb[28].mxu1 %vm250_vm0, %v1655_v38  ;;  %v1080_v31 = vmax.f32 %v2136_v39, 0.0 }
 0x21d   : > { %v1081_v42 = vmax.f32 %v2138_v40, 0.0  ;;  %1334 = vmatprep.mubr.f32.mxu0 %v1826_v0  ;;  %1417 = vmatprep.mubr.f32.mxu1 %v1826_v0 }
 0x21e   : > { %1270 = vmatprep.subr.mxu0 %v1080_v31 }
 0x21f   : > { %1271 = vmatpush1.msra.mxu0 %v1079_v41  ;;  %1354 = vmatpush1.msra.mxu1 %v1081_v42 }
 0x220   : > { %1662 = vmatmul.mubr.msk.f32.vlgmr.msra.gmra.mrb[30].mxu0 %vm250_vm0, %v1653_v10  ;;  %1665 = vmatmul.mubr.msk.f32.vlgmr.msra.gmra.mrb[30].mxu1 %vm250_vm0, %v1653_v10 }
 0x221   : > { %1340 = vmatprep.mubr.f32.mxu0 %v1826_v0  ;;  %1423 = vmatprep.mubr.f32.mxu1 %v1826_v0 }
 0x224   : > { %1663 = vmatmul.mubr.msk.f32.gmra.mrb[32].mxu0 %vm250_vm0, %v1654_v28  ;;  %1666 = vmatmul.mubr.msk.f32.gmra.mrb[32].mxu1 %vm250_vm0, %v1654_v28 }
 0x225   : > { %1346 = vmatprep.mubr.f32.mxu0 %v1826_v0  ;;  %1429 = vmatprep.mubr.f32.mxu1 %v1826_v0 }
 0x228   : > { %1664 = vmatmul.mubr.msk.f32.gmra.mrb[34].mxu0 %vm250_vm0, %v1655_v38  ;;  %1667 = vmatmul.mubr.msk.f32.gmra.mrb[34].mxu1 %vm250_vm0, %v1655_v38 }
 0x2e7   : > { %v1170_v43 = vpop.f32.mrb[24].mxu0  ;;  %v1253_v44 = vpop.f32.mrb[24].mxu1 }
 0x2e8   : > { %v1172_v49 = vpop.f32.mrb[25].mxu0  ;;  %v1255_v50 = vpop.f32.mrb[25].mxu1 }
 0x2eb   : > { %v1176_v51 = vpop.f32.mrb[26].mxu0  ;;  %v1259_v52 = vpop.f32.mrb[26].mxu1 }
 0x2ec   : > { %v1178_v53 = vpop.f32.mrb[27].mxu0  ;;  %v1446_v54 = vadd.f32 %v1259_v52, %v1172_v49  ;;  %v1261_v55 = vpop.f32.mrb[27].mxu1 }
 0x2ed   : > { %v1445_v56 = vadd.f32 %v1178_v53, %v1170_v43  ;;  %v1447_v57 = vadd.f32 %v1261_v55, %v1253_v44  ;;  %v1085_v43 = vadd.f32 %v1077_v6, %v654_v19  ;;  %v1083_v44 = vadd.f32 %v1075_v9, %v652_v48 }
 0x2ef   : > { %v1182_v58 = vpop.f32.mrb[28].mxu0  ;;  %v1265_v59 = vpop.f32.mrb[28].mxu1 }
 0x2f0   : > { %v1461_v60 = vadd.f32 %v1445_v56, %v1265_v59  ;;  %v1184_v61 = vpop.f32.mrb[29].mxu0  ;;  %v1267_v0 = vpop.f32.mrb[29].mxu1 }
 0x2f1   : > { %v1460_v7 = vadd.f32 %v1184_v61, %v1176_v51  ;;  %v1462_v10 = vadd.f32 %v1446_v54, %v1267_v0 }
 0x2f2   : > { %v1476_v23 = vmul.f32 %v1473_v63, %v1461_v60 }
 0x2f3   : > { %v1475_v24 = vmul.f32 %v1473_v63, %v1460_v7  ;;  %v1477_v25 = vmul.f32 %v1473_v63, %v1462_v10  ;;  %v1336_v26 = vpop.f32.mrb[30].mxu0  ;;  %v1419_v27 = vpop.f32.mrb[30].mxu1 }
 0x2f4   : > { %v1491_v28 = vadd.f32 %v1488_v11, %v1476_v23  ;;  %v1338_v29 = vpop.f32.mrb[31].mxu0  ;;  %v1421_v30 = vpop.f32.mrb[31].mxu1 }
 0x2f5   : > { %v1490_v32 = vadd.f32 %v1488_v11, %v1475_v24  ;;  %v1492_v34 = vadd.f32 %v1488_v11, %v1477_v25  ;;  %v1090_v24 = vadd.f32 %v1082_v37, %v659_v21  ;;  %v1088_v21 = vadd.f32 %v1080_v31, %v657_v18 }
 0x2f6   : > { %v1499_v38 = vmax.f32 %v1491_v28, 0.0 }
 0x2f7   : > { %v1498_v49 = vmax.f32 %v1490_v32, 0.0  ;;  %v1500_v51 = vmax.f32 %v1492_v34, 0.0  ;;  %v1342_v52 = vpop.f32.mrb[32].mxu0  ;;  %v1425_v53 = vpop.f32.mrb[32].mxu1 }
 0x2f8   : > { %v1507_v45 = vadd.f32 %v1499_v38, %v1084_v36  ;;  %v1448_v54 = vadd.f32 %v1342_v52, %v1255_v50  ;;  %v1450_v1 = vadd.f32 %v1425_v53, %v1338_v29  ;;  %v1427_v47 = vpop.f32.mrb[33].mxu1  ;;  %v1344_v4 = vpop.f32.mrb[33].mxu0  ;;  %v1086_v29 = vadd.f32 %v1078_v5, %v655_v17 }
 0x2f9   : > { %v1506_v55 = vadd.f32 %v1498_v49, %v1083_v44  ;;  %v1508_v8 = vadd.f32 %v1500_v51, %v1085_v43  ;;  %v1451_v56 = vadd.f32 %v1427_v47, %v1419_v27  ;;  %v1449_v3 = vadd.f32 %v1344_v4, %v1336_v26 }
 0x2fa   : > { %v1515_v19 = vmul.f32 0.33333334, %v1507_v45  ;;  %v1089_v17 = vadd.f32 %v1081_v42, %v658_v22 }
 0x2fb   : > { %v1514_v6 = vmul.f32 0.33333334, %v1506_v55  ;;  %v1516_v46 = vmul.f32 0.33333334, %v1508_v8  ;;  %v1482_v58 = vmul.f32 %v1473_v63, %v1451_v56  ;;  %v1348_v62 = vpop.f32.mrb[34].mxu0  ;;  %v1431_v48 = vpop.f32.mrb[34].mxu1 }
 0x2fc   : > { %1523 = vst [vmem:[%s2179_s8 + $0x8] sm:$0xff] %v1515_v19  ;;  %v1463_v9 = vadd.f32 %v1447_v57, %v1348_v62  ;;  %v1465_v50 = vadd.f32 %v1449_v3, %v1431_v48  ;;  %v1350_v59 = vpop.f32.mrb[35].mxu0  ;;  %v1433_v60 = vpop.f32.mrb[35].mxu1 }
 0x2fd   : > { %1522 = vst [vmem:[%s2179_s8] sm:$0xff] %v1514_v6  ;;  %1524 = vst [vmem:[%s2179_s8 + $0x10] sm:$0xff] %v1516_v46  ;;  %v1497_v61 = vadd.f32 %v1488_v11, %v1482_v58  ;;  %v1464_v0 = vadd.f32 %v1448_v54, %v1350_v59  ;;  %v1466_v7 = vadd.f32 %v1450_v1, %v1433_v60 }
 0x2fe   : > { %v1478_v10 = vmul.f32 %v1473_v63, %v1463_v9  ;;  %v1480_v23 = vmul.f32 %v1473_v63, %v1465_v50 }
 0x2ff   : > { %v1505_v25 = vmax.f32 %v1497_v61, 0.0  ;;  %v1479_v26 = vmul.f32 %v1473_v63, %v1464_v0  ;;  %v1481_v27 = vmul.f32 %v1473_v63, %v1466_v7 }
 0x300   : > { %v1493_v28 = vadd.f32 %v1488_v11, %v1478_v10  ;;  %v1495_v57 = vadd.f32 %v1488_v11, %v1480_v23 }
 0x301   : > { %v1513_v30 = vadd.f32 %v1505_v25, %v1090_v24  ;;  %v1494_v32 = vadd.f32 %v1488_v11, %v1479_v26  ;;  %v1496_v34 = vadd.f32 %v1488_v11, %v1481_v27 }
 0x302   : > { %v1501_v33 = vmax.f32 %v1493_v28, 0.0  ;;  %v1503_v12 = vmax.f32 %v1495_v57, 0.0 }
 0x303   : > { %v1521_v2 = vmul.f32 0.33333334, %v1513_v30  ;;  %v1502_v5 = vmax.f32 %v1494_v32, 0.0  ;;  %v1504_v14 = vmax.f32 %v1496_v34, 0.0 }
 0x304   : > { %v1509_v35 = vadd.f32 %v1501_v33, %v1086_v29  ;;  %v1511_v20 = vadd.f32 %v1503_v12, %v1088_v21 }
 0x305   : > { %1529 = vst [vmem:[%s2179_s8 + $0x38] sm:$0xff] %v1521_v2  ;;  %v1510_v13 = vadd.f32 %v1502_v5, %v1087_v15  ;;  %v1512_v18 = vadd.f32 %v1504_v14, %v1089_v17 }
 0x306   : > { %v1517_v16 = vmul.f32 0.33333334, %v1509_v35  ;;  %v1519_v37 = vmul.f32 0.33333334, %v1511_v20 }
 0x307   : > { %v1518_v39 = vmul.f32 0.33333334, %v1510_v13  ;;  %v1520_v22 = vmul.f32 0.33333334, %v1512_v18 }
 0x308   : > { %1525 = vst [vmem:[%s2179_s8 + $0x18] sm:$0xff] %v1517_v16  ;;  %1527 = vst [vmem:[%s2179_s8 + $0x28] sm:$0xff] %v1519_v37 }
 0x309   : > { %1526 = vst [vmem:[%s2179_s8 + $0x20] sm:$0xff] %v1518_v39  ;;  %1528 = vst [vmem:[%s2179_s8 + $0x30] sm:$0xff] %v1520_v22 }
 0x30a   : > { %1770 = shalt.err (!%p1767_p3)
}
 0x30b   : > { %s1771_s7 = scalar_lea.hbm %s2210_s14, 1024  ;;  %s1775_s5 = scalar_lea.hbm %s2261_s4, 4096 }
 0x30c   : > { %p1772_p5 = scmp.ne.s32.totalorder %s2210_s14, %s1771_s7  ;;  %p1776_p13 = scmp.lt.u32.totalorder %s2210_s14, %s2261_s4 }
 0x30d   : > { %p1777_p0 = scmp.lt.u32.totalorder %s1775_s5, %s1771_s7  ;;  %p1779_p6 = scmp.lt.u32.totalorder %s1771_s7, %s2210_s14 }
 0x30e   : > { %p1773_p7 = pnand %p1772_p5, %p2270_p10 }
 0x30f   : > { %p1778_p2 = por %p1777_p0, %p1776_p13 }
 0x310   : > { %p1774_p8 = pneg %p1773_p7 }
 0x311   : > { %p1780_p11 = por %p1779_p6, %p1778_p2 }
 0x313   : > { %p1781_p12 = pnand %p1780_p11, %p1774_p8 }
 0x315   : > { %1784 = shalt.err (!%p1781_p12)
}
 0x316   : > { %1679 = dma.vmem_to_hbm [thread:$0]  (%p2270_p10), %s2212_s10, 1024, %s2210_s14, %s1531_s19  }
 0x317 PF: > { %p1690_p4 = scmp.ge.s32.totalorder %s1823_s18, 2  ;;  %s1557_s11 = sand.u32 1, %s1811_s15  }
 0x318   : > { %p2271_p9 = scmp.ne.s32.totalorder %s2266_s28, 0  ;;  %s1558_s8 = scalar_lea.sflag [#allocation4], %s1557_s11 }
 0x31a   : > { %p1686_p1 = pnand %p1690_p4, %p2271_p9 }
 0x31c   : > { %1806 = dma.done.wait (!%p1686_p1), %s1558_s8, 1024  }
 0x31d   : > { %1808 = vsyncadd (!%p1686_p1), %s1558_s8, 4294966272  ;;  %p17_p3 = scmp.ge.s32.totalorder %s1879_s21, 6   ;;  %s2272_s15 = smov %s1815_s16 }
 0x31e   : > { %s2273_s16 = smov %s1819_s17  ;;  %s2274_s17 = smov %s1891_s24 }
 0x31f   : > { %s2275_s18 = smov %s1879_s21  ;;  %19 = sbr.rel (!%p17_p3) target bundleno = 5 (0x5), region = 87 }
 0x326   :  { %1563 = vsyncpa [#allocation3], 1 }
 0x327   :  { %1565 = vsyncpa [#allocation3 + $0x1], 1 }
 0x328   :  { %1566 = vsyncpa [#allocation4], 1 }
 0x329   :  { %1568 = vsyncpa [#allocation4 + $0x1], 1 }

</bundles_post_ra>
